<compile_context>
chip_gen: v6e
topology: v6e:2x2x1
jax: 0.10.0
libtpu: 0.0.40
codegen_flags: <defaults>
</compile_context>

<pallas_src>
import jax
import jax.numpy as jnp
from jax.experimental import pallas as pl
from jax.experimental.pallas import tpu as pltpu

# ---------------------------------------------------------------------------
# Task table (cls output dims only -- forward only computes cls losses).
# ---------------------------------------------------------------------------
TASK_CLS_DIMS = {
    "Toxity": 12,
    "Dristribution": 1,
    "Absorption": 3,
    "Metabolism": 10,
    "PCBA": 128,
    "HIV": 1,
}
TASKS = list(TASK_CLS_DIMS.keys())
VMAX = 128      # pad every head's output dim to a full lane width
OUT_SUB = 8     # sublane padding of the per-task loss tile


# ---------------------------------------------------------------------------
# Fused kernel: one grid step == one task.
#   batch_ref : [1, N]        i32  graph id per node          (resident)
#   invc_ref  : [B, 1]        f32  1 / max(node count, 1)     (resident)
#   xs_ref    : [1, L, N, D]  f32  per-layer node embeddings  (per task)
#   w1_ref    : [1, D, D]   b1_ref : [1, 1, D]
#   w2_ref    : [1, D, Vmax] b2_ref: [1, 1, Vmax]            (V padded)
#   y_ref     : [1, B, Vmax] labels   m_ref : [1, B, Vmax] mask (0 on padding)
#   out_ref   : [1, 8, Vmax] f32  loss of this task broadcast over the tile
# ---------------------------------------------------------------------------
def fused_admet_kernel(batch_ref, invc_ref, xs_ref, w1_ref, b1_ref,
                       w2_ref, b2_ref, y_ref, m_ref, out_ref):
    # ---- JK 'sum' over unet layers -> [N, D] ------------------------------
    x = jnp.sum(xs_ref[...], axis=(0, 1))

    # ---- global mean pool via one-hot MXU matmul --------------------------
    B = invc_ref.shape[0]
    N = x.shape[0]
    row_ids = jax.lax.broadcasted_iota(jnp.int32, (B, N), 0)
    onehot = (row_ids == batch_ref[...]).astype(jnp.float32)          # [B, N]
    hg = jnp.dot(onehot, x, preferred_element_type=jnp.float32)       # [B, D]
    hg = hg * invc_ref[...]                                           # mean

    # ---- prediction head: Linear -> ReLU -> Linear ------------------------
    h1 = jnp.dot(hg, w1_ref[0], preferred_element_type=jnp.float32) + b1_ref[0]
    h1 = jnp.maximum(h1, 0.0)
    z = jnp.dot(h1, w2_ref[0], preferred_element_type=jnp.float32) + b2_ref[0]

    # ---- masked-mean BCEWithLogitsLoss (PyTorch-stable form) --------------
    y = y_ref[0]
    m = m_ref[0]
    bce = jnp.maximum(z, 0.0) - z * y + jnp.log1p(jnp.exp(-jnp.abs(z)))
    num = jnp.sum(bce * m)
    den = jnp.maximum(jnp.sum(m), 1.0)      # guard: all-masked batch
    loss = num / den

    # lane-dense per-task output tile
    out_ref[...] = loss * jnp.ones(out_ref.shape, jnp.float32)


# ---------------------------------------------------------------------------
# Wrapper: one pallas_call over all tasks.
# ---------------------------------------------------------------------------
def unet_pretrain_admet_forward(xs_stacked, batch_ids, num_graphs, stacked):
    """Mirrors UnetPretrainADMET.forward: per-task cls BCE loss + summed total."""
    T, L, N, D = xs_stacked.shape
    B = num_graphs

    # per-graph inverse node counts, shared by all tasks (zero-node guard)
    counts = jnp.zeros((B,), jnp.float32).at[batch_ids].add(1.0)
    inv_counts = (1.0 / jnp.maximum(counts, 1.0)).reshape(B, 1)
    batch_2d = batch_ids.reshape(1, N).astype(jnp.int32)

    grid_spec = pltpu.PrefetchScalarGridSpec(
        num_scalar_prefetch=0,
        grid=(T,),
        in_specs=[
            pl.BlockSpec((1, N), lambda t: (0, 0)),              # batch ids
            pl.BlockSpec((B, 1), lambda t: (0, 0)),              # inv counts
            pl.BlockSpec((1, L, N, D), lambda t: (t, 0, 0, 0)),  # xs
            pl.BlockSpec((1, D, D), lambda t: (t, 0, 0)),        # w1
            pl.BlockSpec((1, 1, D), lambda t: (t, 0, 0)),        # b1
            pl.BlockSpec((1, D, VMAX), lambda t: (t, 0, 0)),     # w2 (padded)
            pl.BlockSpec((1, 1, VMAX), lambda t: (t, 0, 0)),     # b2 (padded)
            pl.BlockSpec((1, B, VMAX), lambda t: (t, 0, 0)),     # labels
            pl.BlockSpec((1, B, VMAX), lambda t: (t, 0, 0)),     # mask
        ],
        out_specs=pl.BlockSpec((1, OUT_SUB, VMAX), lambda t: (t, 0, 0)),
    )
    out = pl.pallas_call(
        fused_admet_kernel,
        grid_spec=grid_spec,
        out_shape=jax.ShapeDtypeStruct((T, OUT_SUB, VMAX), jnp.float32),
        compiler_params=pltpu.CompilerParams(
            dimension_semantics=("parallel",)),
    )(batch_2d, inv_counts, xs_stacked,
      stacked["w1"], stacked["b1"], stacked["w2"], stacked["b2"],
      stacked["label"], stacked["mask"])

    separate_loss = out[:, 0, 0]            # [T]
    total = jnp.sum(separate_loss)
    return separate_loss, total


# ---------------------------------------------------------------------------
# Deterministic parameter / label construction (stacked + V-padded).
# ---------------------------------------------------------------------------
def init_stacked_params(key, feature_dim):
    w1s, b1s, w2s, b2s = [], [], [], []
    for task in TASKS:
        v = TASK_CLS_DIMS[task]
        key, k1, k2, k3, k4 = jax.random.split(key, 5)
        w1s.append(0.1 * jax.random.normal(k1, (feature_dim, feature_dim),
                                           jnp.float32))
        b1s.append(0.1 * jax.random.normal(k2, (1, feature_dim), jnp.float32))
        w2 = 0.1 * jax.random.normal(k3, (feature_dim, v), jnp.float32)
        b2 = 0.1 * jax.random.normal(k4, (1, v), jnp.float32)
        w2s.append(jnp.pad(w2, ((0, 0), (0, VMAX - v))))
        b2s.append(jnp.pad(b2, ((0, 0), (0, VMAX - v))))
    return {"w1": jnp.stack(w1s), "b1": jnp.stack(b1s),
            "w2": jnp.stack(w2s), "b2": jnp.stack(b2s)}


def make_padded_labels(key, num_graphs):
    labels, masks = [], []
    for task in TASKS:
        v = TASK_CLS_DIMS[task]
        key, k_valid, k_val = jax.random.split(key, 3)
        value = jax.random.bernoulli(k_val, 0.5, (num_graphs, v)).astype(jnp.float32)
        if task == "HIV":
            # HIV: plain (unmasked) BCEWithLogitsLoss in the reference forward
            label = value
            mask = jnp.ones((num_graphs, v), jnp.float32)
        else:
            # other tasks (incl. PCBA): entries with label < 0 are masked out
            valid = jax.random.bernoulli(k_valid, 0.75, (num_graphs, v))
            label = jnp.where(valid, value, -1.0)
            mask = (label >= 0).astype(jnp.float32)
        labels.append(jnp.pad(label, ((0, 0), (0, VMAX - v))))
        masks.append(jnp.pad(mask, ((0, 0), (0, VMAX - v))))   # padding -> 0
    return jnp.stack(labels), jnp.stack(masks)


# ---------------------------------------------------------------------------
# Pure-JAX reference (same math, no Pallas) for a correctness check.
# ---------------------------------------------------------------------------
def reference_forward(xs_stacked, batch_ids, num_graphs, stacked):
    x = jnp.sum(xs_stacked, axis=1)                         # [T, N, D]
    onehot = jax.nn.one_hot(batch_ids, num_graphs, dtype=jnp.float32).T
    counts = jnp.maximum(jnp.sum(onehot, axis=1, keepdims=True), 1.0)
    losses = []
    for t in range(len(TASKS)):
        hg = (onehot @ x[t]) / counts
        h1 = jnp.maximum(hg @ stacked["w1"][t] + stacked["b1"][t], 0.0)
        z = h1 @ stacked["w2"][t] + stacked["b2"][t]
        y, m = stacked["label"][t], stacked["mask"][t]
        bce = jnp.maximum(z, 0.0) - z * y + jnp.log1p(jnp.exp(-jnp.abs(z)))
        losses.append(jnp.sum(bce * m) / jnp.maximum(jnp.sum(m), 1.0))
    losses = jnp.stack(losses)
    return losses, jnp.sum(losses)


# ---------------------------------------------------------------------------
if __name__ == "__main__":
    # small shapes: L pool layers, N nodes, B graphs, D hidden, T tasks
    L, N, B, D = 3, 64, 8, 32
    T = len(TASKS)

    key = jax.random.PRNGKey(0)
    key, k_params, k_labels, k_xs = jax.random.split(key, 4)

    stacked = init_stacked_params(k_params, D)
    labels, masks = make_padded_labels(k_labels, B)
    stacked["label"], stacked["mask"] = labels, masks

    # synthesized MolUnetEncoder per-layer node outputs, stacked over tasks
    xs_stacked = jax.random.normal(k_xs, (T, L, N, D), jnp.float32)
    # every graph gets N // B nodes (same node batching shared by all tasks)
    batch_ids = jnp.repeat(jnp.arange(B, dtype=jnp.int32), N // B)

    separate_loss, total_loss = unet_pretrain_admet_forward(
        xs_stacked, batch_ids, B, stacked)
    total_loss = jax.block_until_ready(total_loss)
    separate_loss = jax.block_until_ready(separate_loss)

    ref_losses, ref_total = reference_forward(xs_stacked, batch_ids, B, stacked)

    assert jnp.isfinite(total_loss)
    assert bool(jnp.all(separate_loss >= 0.0))
    assert jnp.allclose(separate_loss, ref_losses, rtol=5e-3, atol=5e-4), (
        separate_loss, ref_losses)
    assert jnp.allclose(total_loss, ref_total, rtol=5e-3, atol=5e-4)
    print("KERNEL_OK")
</pallas_src>

<mosaic_0001>
module attributes {stable_mosaic.version = 11 : i64} {
  func.func @fused_admet_kernel(%arg0: i32, %arg1: memref<1x64xi32, #tpu.memory_space<vmem>>, %arg2: memref<8x1xf32, #tpu.memory_space<vmem>>, %arg3: memref<1x3x64x32xf32, #tpu.memory_space<vmem>>, %arg4: memref<1x32x32xf32, #tpu.memory_space<vmem>>, %arg5: memref<1x1x32xf32, #tpu.memory_space<vmem>>, %arg6: memref<1x32x128xf32, #tpu.memory_space<vmem>>, %arg7: memref<1x1x128xf32, #tpu.memory_space<vmem>>, %arg8: memref<1x8x128xf32, #tpu.memory_space<vmem>>, %arg9: memref<1x8x128xf32, #tpu.memory_space<vmem>>, %arg10: memref<1x8x128xf32, #tpu.memory_space<vmem>>) attributes {dimension_semantics = [#tpu.dimension_semantics<parallel>], iteration_bounds = array<i64: 6>, scalar_prefetch = 0 : i64, scratch_operands = 0 : i64, tpu.core_type = #tpu.core_type<tc>, window_params = [{pipeline_mode = #tpu.pipeline_mode<synchronous>, transform_indices = @transform_0, window_bounds = array<i64: 1, 64>}, {pipeline_mode = #tpu.pipeline_mode<synchronous>, transform_indices = @transform_1, window_bounds = array<i64: 8, 1>}, {transform_indices = @transform_2, window_bounds = array<i64: 1, 3, 64, 32>}, {transform_indices = @transform_3, window_bounds = array<i64: 1, 32, 32>}, {transform_indices = @transform_4, window_bounds = array<i64: 1, 1, 32>}, {transform_indices = @transform_5, window_bounds = array<i64: 1, 32, 128>}, {transform_indices = @transform_6, window_bounds = array<i64: 1, 1, 128>}, {transform_indices = @transform_7, window_bounds = array<i64: 1, 8, 128>}, {transform_indices = @transform_8, window_bounds = array<i64: 1, 8, 128>}, {transform_indices = @transform_9, window_bounds = array<i64: 1, 8, 128>}]} {
    %c0 = arith.constant 0 : index
    %c0_0 = arith.constant 0 : index
    %c0_1 = arith.constant 0 : index
    %c0_2 = arith.constant 0 : index
    %0 = vector.load %arg3[%c0, %c0_0, %c0_1, %c0_2] : memref<1x3x64x32xf32, #tpu.memory_space<vmem>>, vector<1x3x64x32xf32>
    %cst = arith.constant dense<0.000000e+00> : vector<64x32xf32>
    %1 = vector.multi_reduction <add>, %0, %cst [0, 1] : vector<1x3x64x32xf32> to vector<64x32xf32>
    %2 = tpu.iota {dimensions = array<i32: 0>} : vector<8x64xi32>
    %c0_3 = arith.constant 0 : index
    %c0_4 = arith.constant 0 : index
    %3 = vector.load %arg1[%c0_3, %c0_4] : memref<1x64xi32, #tpu.memory_space<vmem>>, vector<1x64xi32>
    %4 = vector.broadcast %3 : vector<1x64xi32> to vector<8x64xi32>
    %5 = arith.cmpi eq, %2, %4 : vector<8x64xi32>
    %6 = arith.extui %5 : vector<8x64xi1> to vector<8x64xi32>
    %7 = arith.sitofp %6 : vector<8x64xi32> to vector<8x64xf32>
    %cst_5 = arith.constant dense<0.000000e+00> : vector<8x32xf32>
    %8 = tpu.matmul %7, %1, %cst_5 {dimension_numbers = #tpu.dot_dimension_numbers<[1], [0], [0], [1], [0, 0, 1, 1], [], []>} : vector<8x64xf32>, vector<64x32xf32>, vector<8x32xf32> -> vector<8x32xf32>
    %c0_6 = arith.constant 0 : index
    %c0_7 = arith.constant 0 : index
    %9 = vector.load %arg2[%c0_6, %c0_7] : memref<8x1xf32, #tpu.memory_space<vmem>>, vector<8x1xf32>
    %10 = vector.broadcast %9 : vector<8x1xf32> to vector<8x32xf32>
    %11 = arith.mulf %8, %10 : vector<8x32xf32>
    %c0_8 = arith.constant 0 : index
    %c0_9 = arith.constant 0 : index
    %c0_10 = arith.constant 0 : index
    %12 = vector.load %arg4[%c0_8, %c0_9, %c0_10] : memref<1x32x32xf32, #tpu.memory_space<vmem>>, vector<1x32x32xf32>
    %13 = vector.shape_cast %12 : vector<1x32x32xf32> to vector<32x32xf32>
    %cst_11 = arith.constant dense<0.000000e+00> : vector<8x32xf32>
    %14 = tpu.matmul %11, %13, %cst_11 {dimension_numbers = #tpu.dot_dimension_numbers<[1], [0], [0], [1], [0, 0, 1, 1], [], []>} : vector<8x32xf32>, vector<32x32xf32>, vector<8x32xf32> -> vector<8x32xf32>
    %c0_12 = arith.constant 0 : index
    %c0_13 = arith.constant 0 : index
    %c0_14 = arith.constant 0 : index
    %15 = vector.load %arg5[%c0_12, %c0_13, %c0_14] : memref<1x1x32xf32, #tpu.memory_space<vmem>>, vector<1x1x32xf32>
    %16 = vector.shape_cast %15 : vector<1x1x32xf32> to vector<1x32xf32>
    %17 = vector.broadcast %16 : vector<1x32xf32> to vector<8x32xf32>
    %18 = arith.addf %14, %17 : vector<8x32xf32>
    %cst_15 = arith.constant 0.000000e+00 : f32
    %19 = vector.broadcast %cst_15 : f32 to vector<8x32xf32>
    %20 = arith.maximumf %18, %19 : vector<8x32xf32>
    %c0_16 = arith.constant 0 : index
    %c0_17 = arith.constant 0 : index
    %c0_18 = arith.constant 0 : index
    %21 = vector.load %arg6[%c0_16, %c0_17, %c0_18] : memref<1x32x128xf32, #tpu.memory_space<vmem>>, vector<1x32x128xf32>
    %22 = vector.shape_cast %21 : vector<1x32x128xf32> to vector<32x128xf32>
    %cst_19 = arith.constant dense<0.000000e+00> : vector<8x128xf32>
    %23 = tpu.matmul %20, %22, %cst_19 {dimension_numbers = #tpu.dot_dimension_numbers<[1], [0], [0], [1], [0, 0, 1, 1], [], []>} : vector<8x32xf32>, vector<32x128xf32>, vector<8x128xf32> -> vector<8x128xf32>
    %c0_20 = arith.constant 0 : index
    %c0_21 = arith.constant 0 : index
    %c0_22 = arith.constant 0 : index
    %24 = vector.load %arg7[%c0_20, %c0_21, %c0_22] : memref<1x1x128xf32, #tpu.memory_space<vmem>>, vector<1x1x128xf32>
    %25 = vector.shape_cast %24 : vector<1x1x128xf32> to vector<1x128xf32>
    %26 = vector.broadcast %25 : vector<1x128xf32> to vector<8x128xf32>
    %27 = arith.addf %23, %26 : vector<8x128xf32>
    %c0_23 = arith.constant 0 : index
    %c0_24 = arith.constant 0 : index
    %c0_25 = arith.constant 0 : index
    %28 = vector.load %arg8[%c0_23, %c0_24, %c0_25] : memref<1x8x128xf32, #tpu.memory_space<vmem>>, vector<1x8x128xf32>
    %29 = vector.shape_cast %28 : vector<1x8x128xf32> to vector<8x128xf32>
    %c0_26 = arith.constant 0 : index
    %c0_27 = arith.constant 0 : index
    %c0_28 = arith.constant 0 : index
    %30 = vector.load %arg9[%c0_26, %c0_27, %c0_28] : memref<1x8x128xf32, #tpu.memory_space<vmem>>, vector<1x8x128xf32>
    %31 = vector.shape_cast %30 : vector<1x8x128xf32> to vector<8x128xf32>
    %cst_29 = arith.constant 0.000000e+00 : f32
    %32 = vector.broadcast %cst_29 : f32 to vector<8x128xf32>
    %33 = arith.maximumf %27, %32 : vector<8x128xf32>
    %34 = arith.mulf %27, %29 : vector<8x128xf32>
    %35 = arith.subf %33, %34 : vector<8x128xf32>
    %36 = math.absf %27 : vector<8x128xf32>
    %cst_30 = arith.constant 0.000000e+00 : f32
    %37 = vector.broadcast %cst_30 : f32 to vector<8x128xf32>
    %38 = arith.subf %37, %36 : vector<8x128xf32>
    %39 = math.exp %38 : vector<8x128xf32>
    %40 = math.log1p %39 : vector<8x128xf32>
    %41 = arith.addf %35, %40 : vector<8x128xf32>
    %42 = arith.mulf %41, %31 : vector<8x128xf32>
    %43 = vector.shape_cast %42 : vector<8x128xf32> to vector<1x8x128xf32>
    %cst_31 = arith.constant dense<0.000000e+00> : vector<1xf32>
    %44 = vector.multi_reduction <add>, %43, %cst_31 [1, 2] : vector<1x8x128xf32> to vector<1xf32>
    %45 = vector.shape_cast %44 : vector<1xf32> to vector<1x1x1xf32>
    %46 = vector.extract %45[0, 0, 0] : f32 from vector<1x1x1xf32>
    %47 = vector.shape_cast %31 : vector<8x128xf32> to vector<1x8x128xf32>
    %cst_32 = arith.constant dense<0.000000e+00> : vector<1xf32>
    %48 = vector.multi_reduction <add>, %47, %cst_32 [1, 2] : vector<1x8x128xf32> to vector<1xf32>
    %49 = vector.shape_cast %48 : vector<1xf32> to vector<1x1x1xf32>
    %50 = vector.extract %49[0, 0, 0] : f32 from vector<1x1x1xf32>
    %cst_33 = arith.constant 1.000000e+00 : f32
    %51 = arith.maximumf %50, %cst_33 : f32
    %52 = arith.divf %46, %51 : f32
    %cst_34 = arith.constant 1.000000e+00 : f32
    %53 = vector.broadcast %cst_34 : f32 to vector<1x8x128xf32>
    %54 = vector.broadcast %52 : f32 to vector<1x8x128xf32>
    %55 = arith.mulf %54, %53 : vector<1x8x128xf32>
    %c0_35 = arith.constant 0 : index
    %c0_36 = arith.constant 0 : index
    %c0_37 = arith.constant 0 : index
    %56 = vector.load %arg10[%c0_35, %c0_36, %c0_37] : memref<1x8x128xf32, #tpu.memory_space<vmem>>, vector<1x8x128xf32>
    tpu.vector_store %arg10[%c0_35, %c0_36, %c0_37], %55 {strides = array<i32>} : memref<1x8x128xf32, #tpu.memory_space<vmem>>, vector<1x8x128xf32>,
    return
  }
  func.func @transform_0(%arg0: i32) -> (i32, i32) {
    %c0_i32 = arith.constant 0 : i32
    %c0_i32_0 = arith.constant 0 : i32
    %c0_i32_1 = arith.constant 0 : i32
    return %c0_i32, %c0_i32_0 : i32, i32
  }
  func.func @transform_1(%arg0: i32) -> (i32, i32) {
    %c0_i32 = arith.constant 0 : i32
    %c0_i32_0 = arith.constant 0 : i32
    %c0_i32_1 = arith.constant 0 : i32
    return %c0_i32, %c0_i32_0 : i32, i32
  }
  func.func @transform_2(%arg0: i32) -> (i32, i32, i32, i32) {
    %c0_i32 = arith.constant 0 : i32
    %c0_i32_0 = arith.constant 0 : i32
    %c0_i32_1 = arith.constant 0 : i32
    %c0_i32_2 = arith.constant 0 : i32
    return %arg0, %c0_i32, %c0_i32_0, %c0_i32_1 : i32, i32, i32, i32
  }
  func.func @transform_3(%arg0: i32) -> (i32, i32, i32) {
    %c0_i32 = arith.constant 0 : i32
    %c0_i32_0 = arith.constant 0 : i32
    %c0_i32_1 = arith.constant 0 : i32
    return %arg0, %c0_i32, %c0_i32_0 : i32, i32, i32
  }
  func.func @transform_4(%arg0: i32) -> (i32, i32, i32) {
    %c0_i32 = arith.constant 0 : i32
    %c0_i32_0 = arith.constant 0 : i32
    %c0_i32_1 = arith.constant 0 : i32
    return %arg0, %c0_i32, %c0_i32_0 : i32, i32, i32
  }
  func.func @transform_5(%arg0: i32) -> (i32, i32, i32) {
    %c0_i32 = arith.constant 0 : i32
    %c0_i32_0 = arith.constant 0 : i32
    %c0_i32_1 = arith.constant 0 : i32
    return %arg0, %c0_i32, %c0_i32_0 : i32, i32, i32
  }
  func.func @transform_6(%arg0: i32) -> (i32, i32, i32) {
    %c0_i32 = arith.constant 0 : i32
    %c0_i32_0 = arith.constant 0 : i32
    %c0_i32_1 = arith.constant 0 : i32
    return %arg0, %c0_i32, %c0_i32_0 : i32, i32, i32
  }
  func.func @transform_7(%arg0: i32) -> (i32, i32, i32) {
    %c0_i32 = arith.constant 0 : i32
    %c0_i32_0 = arith.constant 0 : i32
    %c0_i32_1 = arith.constant 0 : i32
    return %arg0, %c0_i32, %c0_i32_0 : i32, i32, i32
  }
  func.func @transform_8(%arg0: i32) -> (i32, i32, i32) {
    %c0_i32 = arith.constant 0 : i32
    %c0_i32_0 = arith.constant 0 : i32
    %c0_i32_1 = arith.constant 0 : i32
    return %arg0, %c0_i32, %c0_i32_0 : i32, i32, i32
  }
  func.func @transform_9(%arg0: i32) -> (i32, i32, i32) {
    %c0_i32 = arith.constant 0 : i32
    %c0_i32_0 = arith.constant 0 : i32
    %c0_i32_1 = arith.constant 0 : i32
    return %arg0, %c0_i32, %c0_i32_0 : i32, i32, i32
  }
}

</mosaic_0001>

<bundles_post_ra>
// kernel: tpu_custom_call.1
= control target key start
LH: loop header
LB: loop body
LE: loop exit
PB: predicated region body
PF: predicated region fallthrough
CT: control target
= control target key end

     0   :  { %s1410_s0 = inlined_call_operand.vmem [shape: s32[1,64], index: 0, kind: input, shape index: {}]   ;;  %s1411_s1 = inlined_call_operand.vmem [shape: f32[8,1], index: 1, kind: input, shape index: {}]   ;;  %s1412_s2 = inlined_call_operand.vmem [shape: f32[6,3,64,32], index: 2, kind: input, shape index: {}]   ;;  %s1413_s3 = inlined_call_operand.vmem [shape: f32[6,32,32], index: 3, kind: input, shape index: {}]   ;;  %s1414_s4 = inlined_call_operand.vmem [shape: f32[6,1,32], index: 4, kind: input, shape index: {}]   ;;  %s1415_s5 = inlined_call_operand.vmem [shape: f32[6,32,128], index: 5, kind: input, shape index: {}]   ;;  %s1416_s6 = inlined_call_operand.vmem [shape: f32[6,1,128], index: 6, kind: input, shape index: {}]   ;;  %s1417_s7 = inlined_call_operand.vmem [shape: f32[6,8,128], index: 7, kind: input, shape index: {}]   ;;  %s1418_s8 = inlined_call_operand.vmem [shape: f32[6,8,128], index: 8, kind: input, shape index: {}]   ;;  %s1419_s9 = inlined_call_operand.hbm [shape: f32[6,8,128], index: 9, kind: output, shape index: {}]  }
   0x1   :  { %1420 = sst [smem:[#allocation5_spill]] %s1410_s0 }
   0x2   :  { %1421 = sst [smem:[#allocation6_spill]] %s1411_s1 }
   0x3   :  { %14 = vsyncpa [#allocation3], 0 }
   0x4   :  { %16 = vsyncpa [#allocation3 + $0x1], 0  ;;  %s1201_s30 = smov 0   ;;  %s1203_s10 = smov 0  }
   0x5   :  { %s1205_s11 = smov 0   ;;  %s1207_s12 = smov 0  }
   0x6 LB: > { %s1222_s13 = sadd.s32 4294967295, %s1144_s12   ;;  %s942_s14 = sadd.s32 4294967294, %s1144_s12   ;;  %s1144_s12 = sphi %s1207_s12, %s1429_s12   ;;  %s1140_s11 = sphi %s1205_s11, %s1428_s11   ;;  %s1136_s10 = sphi %s1203_s10, %s1427_s10   ;;  %s1132_s30 = sphi %s1201_s30, %s1426_s30  }
   0x7   : > { %s1226_s15 = sadd.s32 1, %s1144_s12   ;;  %s253_s16 = sadd.s32 1, %s1140_s11 }
   0x8   : > { %s250_s17 = ssub.s32 %s1144_s12, %s1226_s15  ;;  %p263_p0 = scmp.ne.s32.totalorder %s1140_s11, %s1136_s10 }
   0x9   : > { %p251_p1 = scmp.eq.s32.totalorder %s250_s17, 0  ;;  %p264_p2 = scmp.eq.s32.totalorder %s1222_s13, 5 }
   0xa   : > { %p269_p3 = scmp.ne.s32.totalorder %s1136_s10, %s1132_s30  ;;  %p270_p4 = scmp.eq.s32.totalorder %s942_s14, 5 }
   0xb   : > { %s1237_s18 = scalar_select %p251_p1, %s1140_s11, %s253_s16  }
   0xc   : > { %p1239_p5 = por %p264_p2, %p263_p0  ;;  %p1243_p6 = por %p270_p4, %p269_p3 }
   0xd   : > { %p945_p7 = scmp.ge.s32.totalorder %s1144_s12, 1  ;;  %p344_p8 = scmp.lt.s32.totalorder %s1144_s12, 7 }
   0xf   : > { %p345_p9 = pnand %p945_p7, %p344_p8 }
  0x10   : > { %p404_p10 = scmp.lt.s32.totalorder (!%p345_p9), %s1222_s13, 5  ;;  %s1424_s1 = sld [smem:[#allocation6_spill]] (!%p345_p9) }
  0x11   : > { %348 = sbr.rel (%p345_p9) target bundleno = 962 (0x3c2), region = 56  ;;  %s1425_s0 = sld [smem:[#allocation5_spill]] (!%p345_p9) }
  0x12   : > { %s962_s21 = sshll.u32 (!%p345_p9), %s1222_s13, 7 }
  0x16   : > { %v1146_v0 = vmov 0.0   ;;  %vm1147_vm0 = vmmov 0   ;;  %v582_v1 = vld [vmem:[%s1424_s1] sm:$0xff]  ;;  %s1257_s23 = scalar_select %p404_p10, %s1222_s13, 5  ;;  %v1148_v2 = vmov 0   ;;  %vm457_vm1 = vcmask 261120  }
  0x17   : > { %986 = vmatprep.subr.mxu0 %v1146_v0  ;;  %1002 = vmatprep.mubr.msk.f32.mxu0 %vm1147_vm0, %v1146_v0  ;;  %v498_v52 = vlaneseq  ;;  %vm508_vm3 = vcmask 523264   ;;  %s1375_s1 = scalar_lea.hbm %s1419_s9, %s962_s21 }
  0x18   : > { %1077 = vset.pattern.permute.xlu0 %v1148_v2  ;;  %1005 = vmatprep.subr.mxu1 %v1146_v0  ;;  %s1027_s24 = smul.u32 192, %s1257_s23  ;;  %s965_s25 = sshll.u32 %s1257_s23, 5 }
  0x19   : > { %585 = vperm.xlu0 %1077, %v582_v1   ;;  %1013 = vmatprep.mubr.msk.f32.mxu1 %vm1147_vm0, %v1146_v0  ;;  %s1269_s28 = scalar_lea.vmem %s1413_s3, %s965_s25  ;;  %v499_v2 = vshrl.u32 %v498_v52, 7  ;;  %s421_s26 = scalar_lea.vmem %s1415_s5, %s965_s25 }
  0x1a   : > { %s1274_s16 = scalar_lea.vmem %s1412_s2, %s1027_s24  ;;  %v592_v3 = vld [vmem:[%s1269_s28 + $0x18] sm:$0xff]  ;;  %v591_v4 = vld [vmem:[%s1269_s28 + $0x10] sm:$0xff]  ;;  %s952_s29 = sshll.u32 %s1257_s23, 3 }
  0x1b   : > { %v440_v5 = vld [vmem:[%s1274_s16 + $0x38] sm:$0xff]  ;;  %1006 = vmatpush3.msra.mxu1 %v592_v3  ;;  %v439_v11 = vld [vmem:[%s1274_s16 + $0x30] sm:$0xff]  ;;  %v438_v18 = vld [vmem:[%s1274_s16 + $0x28] sm:$0xff]  ;;  %s432_s17 = scalar_lea.vmem %s1418_s8, %s952_s29  ;;  %s424_s24 = scalar_lea.vmem %s1416_s6, %s1257_s23 }
  0x1c   : > { %v448_v6 = vld [vmem:[%s1274_s16 + $0x78] sm:$0xff]  ;;  %v493_v8 = vsel %vm457_vm1, %v440_v5, 0.0  ;;  %v447_v12 = vld [vmem:[%s1274_s16 + $0x70] sm:$0xff]  ;;  %1007 = vmatprep.subr.mxu1 %v1146_v0  ;;  %v488_v15 = vsel %vm457_vm1, %v439_v11, 0.0  ;;  %v446_v19 = vld [vmem:[%s1274_s16 + $0x68] sm:$0xff]  ;;  %v483_v22 = vsel %vm457_vm1, %v438_v18, 0.0  ;;  %s428_s27 = scalar_lea.vmem %s1417_s7, %s952_s29 }
  0x1d   : > { %v456_v7 = vld [vmem:[%s1274_s16 + $0xb8] sm:$0xff]  ;;  %v494_v9 = vsel %vm457_vm1, %v448_v6, 0.0  ;;  %v455_v13 = vld [vmem:[%s1274_s16 + $0xb0] sm:$0xff]  ;;  %v489_v16 = vsel %vm457_vm1, %v447_v12, 0.0  ;;  %v454_v20 = vld [vmem:[%s1274_s16 + $0xa8] sm:$0xff]  ;;  %1008 = vmatpush3.msra.mxu1 %v591_v4  ;;  %v484_v23 = vsel %vm457_vm1, %v446_v19, 0.0 }
  0x1e   : > { %v496_v10 = vsel %vm457_vm1, %v456_v7, 0.0  ;;  %v495_v14 = vadd.f32 %v494_v9, %v493_v8  ;;  %v491_v17 = vsel %vm457_vm1, %v455_v13, 0.0  ;;  %v490_v21 = vadd.f32 %v489_v16, %v488_v15  ;;  %v437_v25 = vld [vmem:[%s1274_s16 + $0x20] sm:$0xff]  ;;  %1009 = vmatprep.subr.mxu1 %v1146_v0  ;;  %v436_v32 = vld [vmem:[%s1274_s16 + $0x18] sm:$0xff]  ;;  %v435_v39 = vld [vmem:[%s1274_s16 + $0x10] sm:$0xff]  ;;  %s1149_s29 = smov 1.0  }
  0x1f   : > { %v486_v24 = vsel %vm457_vm1, %v454_v20, 0.0  ;;  %v445_v26 = vld [vmem:[%s1274_s16 + $0x60] sm:$0xff]  ;;  %v485_v29 = vadd.f32 %v484_v23, %v483_v22  ;;  %v478_v30 = vsel %vm457_vm1, %v437_v25, 0.0  ;;  %v444_v33 = vld [vmem:[%s1274_s16 + $0x58] sm:$0xff]  ;;  %v473_v38 = vsel %vm457_vm1, %v436_v32, 0.0  ;;  %v443_v40 = vld [vmem:[%s1274_s16 + $0x50] sm:$0xff] }
  0x20   : > { %v453_v27 = vld [vmem:[%s1274_s16 + $0xa0] sm:$0xff]  ;;  %v497_v28 = vadd.f32 %v496_v10, %v495_v14  ;;  %v479_v31 = vsel %vm457_vm1, %v445_v26, 0.0  ;;  %v452_v34 = vld [vmem:[%s1274_s16 + $0x98] sm:$0xff]  ;;  %v492_v35 = vadd.f32 %v491_v17, %v490_v21  ;;  %v474_v42 = vsel %vm457_vm1, %v444_v33, 0.0  ;;  %v451_v43 = vld [vmem:[%s1274_s16 + $0x90] sm:$0xff] }
  0x21   : > { %v480_v36 = vadd.f32 %v479_v31, %v478_v30  ;;  %v481_v37 = vsel %vm457_vm1, %v453_v27, 0.0  ;;  %v487_v41 = vadd.f32 %v486_v24, %v485_v29  ;;  %v468_v44 = vsel %vm457_vm1, %v435_v39, 0.0  ;;  %v434_v45 = vld [vmem:[%s1274_s16 + $0x8] sm:$0xff]  ;;  %v433_v50 = vld [vmem:[%s1274_s16] sm:$0xff]  ;;  %v677_v15 = vld [vmem:[%s421_s26 + $0x18] sm:$0xff] }
  0x22   : > { %987 = vmatpush3.msra.mxu0 %v497_v28  ;;  %v442_v46 = vld [vmem:[%s1274_s16 + $0x48] sm:$0xff]  ;;  %v475_v47 = vadd.f32 %v474_v42, %v473_v38  ;;  %v476_v48 = vsel %vm457_vm1, %v452_v34, 0.0  ;;  %v469_v49 = vsel %vm457_vm1, %v443_v40, 0.0  ;;  %v441_v51 = vld [vmem:[%s1274_s16 + $0x40] sm:$0xff]  ;;  %v463_v56 = vsel %vm457_vm1, %v434_v45, 0.0  ;;  %v676_v17 = vld [vmem:[%s421_s26 + $0x10] sm:$0xff] }
  0x23   : > { %988 = vmatprep.subr.mxu0 %v1146_v0  ;;  %v482_v53 = vadd.f32 %v481_v37, %v480_v36  ;;  %v470_v54 = vadd.f32 %v469_v49, %v468_v44  ;;  %v450_v55 = vld [vmem:[%s1274_s16 + $0x88] sm:$0xff]  ;;  %v464_v57 = vsel %vm457_vm1, %v442_v46, 0.0  ;;  %v471_v58 = vsel %vm457_vm1, %v451_v43, 0.0  ;;  %v449_v63 = vld [vmem:[%s1274_s16 + $0x80] sm:$0xff]  ;;  %s401_s16 = sand.u32 1, %s1136_s10  }
  0x24   : > { %989 = vmatpush3.msra.mxu0 %v492_v35  ;;  %v458_v59 = vsel %vm457_vm1, %v433_v50, 0.0  ;;  %v459_v60 = vsel %vm457_vm1, %v441_v51, 0.0  ;;  %v477_v61 = vadd.f32 %v476_v48, %v475_v47  ;;  %v465_v62 = vadd.f32 %v464_v57, %v463_v56  ;;  %v954_v5 = vld [vmem:[%s1425_s0] ss:$0 sm:$0xff]  ;;  %v590_v10 = vld [vmem:[%s1269_s28 + $0x8] sm:$0xff] }
  0x25   : > { %990 = vmatprep.subr.mxu0 %v1146_v0  ;;  %v466_v1 = vsel %vm457_vm1, %v450_v55, 0.0  ;;  %v472_v3 = vadd.f32 %v471_v58, %v470_v54  ;;  %v460_v4 = vadd.f32 %v459_v60, %v458_v59  ;;  %v461_v6 = vsel %vm457_vm1, %v449_v63, 0.0  ;;  %1010 = vmatpush3.msra.mxu1 %v590_v10  ;;  %v589_v11 = vld [vmem:[%s1269_s28] sm:$0xff]  ;;  %v675_v18 = vld [vmem:[%s421_s26 + $0x8] sm:$0xff]  ;;  %s416_s28 = scalar_lea.vmem %s1414_s4, %s1257_s23 }
  0x26   : > { %991 = vmatpush3.msra.mxu0 %v487_v41  ;;  %v467_v7 = vadd.f32 %v466_v1, %v465_v62  ;;  %vm505_vm2 = vcmp.eq.s32.totalorder %v499_v2, %v954_v5  ;;  %1011 = vmatprep.subr.mxu1 %v1146_v0  ;;  %v674_v19 = vld [vmem:[%s421_s26] sm:$0xff] }
  0x27   : > { %992 = vmatprep.subr.mxu0 %v1146_v0  ;;  %v462_v8 = vadd.f32 %v461_v6, %v460_v4  ;;  %v955_v9 = vsel %vm505_vm2, 1.0, %v1146_v0  ;;  %1012 = vmatpush3.msra.mxu1 %v589_v11  ;;  %v957_v20 = vld [vmem:[%s416_s28] ss:$0 sm:$0xff] }
  0x28   : > { %993 = vmatpush3.msra.mxu0 %v482_v53  ;;  %1016 = vmatprep.subr.mxu1 %v1146_v0  ;;  %v759_v25 = vld [vmem:[%s432_s17] sm:$0xff]  ;;  %s946_s17 = sshll.u32 %s401_s16, 3 }
  0x29   : > { %994 = vmatprep.subr.mxu0 %v1146_v0  ;;  %787 = vadd.xlane.f32.xlu1 %v759_v25  ;;  %v758_v35 = vld [vmem:[%s428_s27] sm:$0xff]  ;;  %s403_s22 = scalar_lea.vmem [#allocation2], %s946_s17 }
  0x2a   : > { %995 = vmatpush3.msra.mxu0 %v477_v61 }
  0x2b   : > { %996 = vmatprep.subr.mxu0 %v1146_v0 }
  0x2c   : > { %997 = vmatpush3.msra.mxu0 %v472_v3 }
  0x2d   : > { %998 = vmatprep.subr.mxu0 %v1146_v0 }
  0x2e   : > { %999 = vmatpush3.msra.mxu0 %v467_v7 }
  0x2f   : > { %1000 = vmatprep.subr.mxu0 %v1146_v0 }
  0x30   : > { %1001 = vmatpush3.msra.mxu0 %v462_v8 }
  0x31   : > { %1003 = vmatmul.mubr.msk.f32.vlgmr.msra.gmra.mxu0 %vm508_vm3, %v955_v9 }
  0x94   : > { %v586_v12 = vpop.permute.xlu0 %585 }
  0xb2   : > { %v788_v47 = vpop.xlane.xlu1 %787 }
  0xb3   : > { %v789_v48 = vrot.slane %v788_v47, 4 }
  0xb5   : > { %v790_v49 = vadd.f32 %v789_v48, %v788_v47 }
  0xb7   : > { %v791_v50 = vrot.slane %v790_v49, 2 }
  0xb9   : > { %v792_v54 = vadd.f32 %v791_v50, %v790_v49 }
  0xbb   : > { %v793_v57 = vrot.slane %v792_v54, 1 }
  0xbd   : > { %v794_v60 = vadd.f32 %v793_v57, %v792_v54 }
  0xf1   : > { %v578_v13 = vpop.f32.mrf.mxu0 }
  0xf2   : > { %v588_v14 = vmul.f32 %v586_v12, %v578_v13 }
  0xf3   : > { %v1004_v16 = vpop.f32.mrf.mxu0 }
  0xf4   : > { %1014 = vmatmul.mubr.msk.f32.vlgmr.msra.gmra.mxu1 %vm457_vm1, %v588_v14 }
  0xf5   : > { %1017 = vmatpush3.msra.mxu1 %v677_v15  ;;  %1024 = vmatprep.mubr.msk.f32.mxu1 %vm1147_vm0, %v1146_v0 }
  0xf6   : > { %1018 = vmatprep.subr.mxu1 %v1146_v0 }
  0xf7   : > { %1019 = vmatpush3.msra.mxu1 %v676_v17 }
  0xf8   : > { %1020 = vmatprep.subr.mxu1 %v1146_v0 }
  0xf9   : > { %1021 = vmatpush3.msra.mxu1 %v675_v18 }
  0xfa   : > { %1022 = vmatprep.subr.mxu1 %v1146_v0  ;;  %v959_v0 = vld [vmem:[%s424_s24] ss:$0 sm:$0xff]  ;;  %s817_s24 = sshll.u32 %s403_s22, 4  ;;  %s818_s24 = int_to_ptr.vmem [resolvable:$true] %s817_s24 }
  0xfb   : > { %1023 = vmatpush3.msra.mxu1 %v674_v19 }
 0x1b4   : > { %v669_v21 = vpop.f32.mrf.mxu1 }
 0x1b5   : > { %v670_v22 = vadd.f32 %v957_v20, %v669_v21 }
 0x1b6   : > { %v1015_v23 = vpop.f32.mrf.mxu1 }
 0x1b7   : > { %v673_v24 = vmax.f32 %v670_v22, 0.0 }
 0x1b9   : > { %1025 = vmatmul.mubr.msk.f32.vlgmr.msra.gmra.mxu1 %vm457_vm1, %v673_v24 }
 0x279   : > { %v754_v26 = vpop.f32.mrf.mxu1 }
 0x27a   : > { %v755_v27 = vadd.f32 %v959_v0, %v754_v26 }
 0x27b   : > { %v1026_v28 = vpop.f32.mrf.mxu1 }
 0x27c   : > { %v763_v29 = vand.u32 2147483647, %v755_v27  ;;  %v760_v37 = vmax.f32 %v755_v27, 0.0  ;;  %v761_v38 = vmul.f32 %v758_v35, %v755_v27 }
 0x27e   : > { %v764_v30 = vsub.f32 0.0, %v763_v29  ;;  %v762_v43 = vsub.f32 %v760_v37, %v761_v38 }
 0x280   : > { %v765_v31 = vmul.f32 1.442695, %v764_v30 }
 0x282   : > { %1078 = vpow2.f32 %v765_v31 }
 0x28f   : > { %v1079_v32 = vpop.eup %1078 }
 0x290   : > { %v767_v33 = vadd.f32 1.0, %v1079_v32  ;;  %v770_v34 = vmul.f32 -0.5, %v1079_v32  ;;  %v773_v39 = vand.u32 2147483647, %v1079_v32 }
 0x292   : > { %1080 = vlog2.f32 %v767_v33  ;;  %v771_v36 = vadd.f32 1.0, %v770_v34  ;;  %vm774_vm4 = vcmp.lt.f32.partialorder %v773_v39, 0.0004427343 }
 0x294   : > { %v772_v42 = vmul.f32 %v1079_v32, %v771_v36 }
 0x29f   : > { %v1081_v40 = vpop.eup %1080 }
 0x2a0   : > { %v769_v41 = vmul.f32 0.6931472, %v1081_v40 }
 0x2a2   : > { %v775_v44 = vsel %vm774_vm4, %v772_v42, %v769_v41 }
 0x2a3   : > { %v776_v45 = vadd.f32 %v775_v44, %v762_v43 }
 0x2a5   : > { %v777_v46 = vmul.f32 %v776_v45, %v759_v25 }
 0x2a7   : > { %778 = vadd.xlane.f32.xlu0 %v777_v46 }
 0x330   : > { %v779_v51 = vpop.xlane.xlu0 %778 }
 0x331   : > { %v780_v52 = vrot.slane %v779_v51, 4 }
 0x333   : > { %v781_v53 = vadd.f32 %v780_v52, %v779_v51 }
 0x335   : > { %v782_v55 = vrot.slane %v781_v53, 2 }
 0x337   : > { %v783_v56 = vadd.f32 %v782_v55, %v781_v53 }
 0x339   : > { %v784_v58 = vrot.slane %v783_v56, 1 }
 0x33b   : > { %v785_v59 = vadd.f32 %v784_v58, %v783_v56 }
 0x33d   : > { %1028 = vpush %v785_v59 }
 0x33e   : > { %1030 = vpush %v794_v60 }
 0x36e   : > { %s1029_s23 = spop %1028 }
 0x36f   : > { %s1031_s28 = spop %1030 }
 0x370   : > { %s796_s14 = smax.f32 %s1149_s29, %s1031_s28  ;;  %s804_s28 = scalar_lea.sflag [#allocation3], %s401_s16 }
 0x371   : > { %v797_v61 = vstv %s796_s14  ;;  %s1084_s29 = scalar_lea.vmem %s818_s24, 128  ;;  %s1150_s14 = smov [#allocation2]  }
 0x372   : > { %1082 = vrcp.f32 %v797_v61  ;;  %p1085_p11 = scmp.ne.s32.totalorder %s818_s24, %s1084_s29  ;;  %s1088_s13 = sshll.u32 %s1150_s14, 4  ;;  %s1089_s13 = int_to_ptr.vmem [resolvable:$false] %s1088_s13 }
 0x373   : > { %s1090_s17 = scalar_lea.vmem %s1089_s13, 256  ;;  %p1091_p0 = scmp.lt.s32.totalorder %s818_s24, %s1089_s13 }
 0x374   : > { %p1086_p12 = pnand %p1085_p11, %p1239_p5  ;;  %p1092_p1 = scmp.lt.s32.totalorder %s1090_s17, %s1084_s29 }
 0x376   : > { %p1087_p13 = pneg %p1086_p12  ;;  %p1093_p2 = por %p1092_p1, %p1091_p0 }
 0x378   : > { %p1094_p3 = pnand %p1093_p2, %p1087_p13 }
 0x37f   : > { %v1083_v62 = vpop.eup %1082 }
 0x380   : > { %1032 = vpush %v1083_v62 }
 0x3b1   : > { %s1033_s26 = spop %1032 }
 0x3b2   : > { %s800_s25 = smul.f32 %s1033_s26, %s1029_s23 }
 0x3b4   : > { %v801_v63 = vstv %s800_s25 }
 0x3b5   : > { %802 = vst [vmem:[%s403_s22] sm:$0xff] %v801_v63 }
 0x3b6   : > { %1097 = shalt.err (!%p1094_p3)
}
 0x3b7   : > { %s1098_s0 = scalar_lea.hbm %s1375_s1, 128  ;;  %s1102_s21 = scalar_lea.hbm %s1419_s9, 768 }
 0x3b8   : > { %p1099_p4 = scmp.ne.s32.totalorder %s1375_s1, %s1098_s0  ;;  %p1103_p9 = scmp.lt.s32.totalorder %s1375_s1, %s1419_s9 }
 0x3b9   : > { %p1104_p10 = scmp.lt.s32.totalorder %s1102_s21, %s1098_s0 }
 0x3ba   : > { %p1100_p7 = pnand %p1099_p4, %p1239_p5 }
 0x3bb   : > { %p1105_p11 = por %p1104_p10, %p1103_p9 }
 0x3bc   : > { %p1101_p8 = pneg %p1100_p7 }
 0x3be   : > { %p1106_p12 = pnand %p1105_p11, %p1101_p8 }
 0x3c0   : > { %1109 = shalt.err (!%p1106_p12)
}
 0x3c1   : > { %1034 = dma.vmem_to_hbm [thread:$0]  (%p1239_p5), %s818_s24, 128, %s1375_s1, %s804_s28  }
 0x3c2 PF: > { %p1040_p13 = scmp.ge.s32.totalorder %s1144_s12, 2  ;;  %s829_s25 = sand.u32 1, %s1132_s30  }
 0x3c3   : > { %s830_s27 = scalar_lea.sflag [#allocation3], %s829_s25 }
 0x3c4   : > { %p1037_p0 = pnand %p1040_p13, %p1243_p6 }
 0x3c6   : > { %p1038_p1 = pneg %p1037_p0 }
 0x3c8   : > { %1127 = dma.done.wait (%p1038_p1), %s830_s27, 128  }
 0x3c9   : > { %1129 = vsyncadd (%p1038_p1), %s830_s27, 4294967168  ;;  %p19_p2 = scmp.ge.s32.totalorder %s1226_s15, 8   ;;  %s1426_s30 = smov %s1136_s10 }
 0x3ca   : > { %s1427_s10 = smov %s1140_s11  ;;  %s1428_s11 = smov %s1237_s18 }
 0x3cb   : > { %s1429_s12 = smov %s1226_s15  ;;  %21 = sbr.rel (!%p19_p2) target bundleno = 6 (0x6), region = 109 }
 0x3d0   :  { %835 = vsyncpa [#allocation3], 1 }
 0x3d1   :  { %837 = vsyncpa [#allocation3 + $0x1], 1 }

</bundles_post_ra>
